<compile_context>
chip_gen: v5e
topology: v5e:2x2
jax: 0.10.0
libtpu: 0.0.40
codegen_flags: <defaults>
</compile_context>

<pallas_src>
import functools

import jax
import jax.numpy as jnp
from jax.experimental import pallas as pl
from jax.experimental.pallas import tpu as pltpu


def _round_up(v, m):
    return ((v + m - 1) // m) * m


# ----------------------------------------------------------------------------
# Fused (im2col-matmul + BN bias + Mish) kernel: one dot per row tile.
# ----------------------------------------------------------------------------
def _conv_bn_mish_kernel(lhs_ref, w_ref, bias_ref, o_ref):
    # lhs_ref : (TM, K)      bf16  im2col rows, K = k*k*C_in (lane-dense LHS)
    # w_ref   : (K, C_out)   bf16  BN scale already folded in
    # bias_ref: (1, C_out)   f32   folded BN bias
    # o_ref   : (TM, C_out)  f32
    acc = jnp.dot(lhs_ref[...], w_ref[...],
                  preferred_element_type=jnp.float32)
    y = acc + bias_ref[...]
    # Mish(y) = y * tanh(softplus(y)) = y * n/(n+2), n = e*(e+2), e = exp(y).
    # Single transcendental; clamp: for y > 20, n/(n+2) == 1 exactly in f32.
    e = jnp.exp(jnp.minimum(y, 20.0))
    n = e * (e + 2.0)
    o_ref[...] = (y * (n / (n + 2.0))).astype(o_ref.dtype)


# ----------------------------------------------------------------------------
# Wrapper: NCHW in / NCHW out (PyTorch semantics).
# ----------------------------------------------------------------------------
@functools.partial(jax.jit, static_argnames=("kernel_size", "stride"))
def basic_conv_forward(x, conv_w, gamma, beta, running_mean, running_var,
                       kernel_size, stride=1):
    """x: (N, C_in, H, W) NCHW; conv_w: (C_out, C_in, k, k) OIHW."""
    eps = 1e-5
    N, C_in, H, W = x.shape
    C_out = conv_w.shape[0]
    k = kernel_size
    pad = k // 2
    OH = (H + 2 * pad - k) // stride + 1
    OW = (W + 2 * pad - k) // stride + 1
    K = k * k * C_in
    M = N * OH * OW

    # ---- glue (plain JAX, fused by XLA): layout + im2col + BN folding ----
    x_nhwc = jnp.transpose(x, (0, 2, 3, 1)).astype(jnp.float32)
    x_pad = jnp.pad(x_nhwc, ((0, 0), (pad, pad), (pad, pad), (0, 0)))
    cols = []
    for kh in range(k):
        for kw in range(k):
            cols.append(
                x_pad[:, kh:kh + stride * (OH - 1) + 1:stride,
                         kw:kw + stride * (OW - 1) + 1:stride, :])
    # (N, OH, OW, k*k*C_in) -> (M, K), bf16 cast done once here (not per tap).
    lhs = jnp.concatenate(cols, axis=-1).reshape(M, K).astype(jnp.bfloat16)

    inv_std = jax.lax.rsqrt(running_var + eps)
    scale = gamma * inv_std                               # (C_out,)
    bias = (beta - running_mean * scale).astype(jnp.float32).reshape(1, C_out)

    # Fold BN scale into the weights; (C_out,C_in,kh,kw) -> (K, C_out) bf16.
    w_mat = conv_w * scale[:, None, None, None]
    w_mat = jnp.transpose(w_mat, (2, 3, 1, 0)).reshape(K, C_out)
    w_mat = w_mat.astype(jnp.bfloat16)

    # ---- output-row tiling over M ----
    if M >= 2048:
        TM = 256
    elif M >= 128:
        TM = 128
    else:
        TM = _round_up(M, 8)
    M_p = _round_up(M, TM)
    if M_p != M:
        lhs = jnp.pad(lhs, ((0, M_p - M), (0, 0)))

    flops = 2 * M_p * K * C_out
    bytes_accessed = (M_p * K * 2            # bf16 im2col LHS
                      + K * C_out * 2        # bf16 weights
                      + C_out * 4            # bias
                      + M_p * C_out * 4)     # f32 output
    cost = pl.CostEstimate(flops=flops,
                           transcendentals=M_p * C_out,
                           bytes_accessed=bytes_accessed)

    out = pl.pallas_call(
        _conv_bn_mish_kernel,
        out_shape=jax.ShapeDtypeStruct((M_p, C_out), jnp.float32),
        grid_spec=pltpu.PrefetchScalarGridSpec(
            num_scalar_prefetch=0,
            grid=(M_p // TM,),
            in_specs=[
                pl.BlockSpec((TM, K), lambda i: (i, 0)),
                pl.BlockSpec((K, C_out), lambda i: (0, 0)),
                pl.BlockSpec((1, C_out), lambda i: (0, 0)),
            ],
            out_specs=pl.BlockSpec((TM, C_out), lambda i: (i, 0)),
        ),
        compiler_params=pltpu.CompilerParams(
            dimension_semantics=("parallel",),
            vmem_limit_bytes=40 * 1024 * 1024,   # fits v7x 64 MiB/TC with headroom
        ),
        cost_estimate=cost,
    )(lhs, w_mat, bias)

    out_nhwc = out[:M].reshape(N, OH, OW, C_out)
    # NOTE: if this layer feeds another Pallas conv, return out_nhwc (NHWC)
    # and skip this transpose to avoid an extra HBM round trip.
    return jnp.transpose(out_nhwc, (0, 3, 1, 2))


# ----------------------------------------------------------------------------
# Pure-JAX f32 reference (exact PyTorch-module semantics) for a sanity check.
# ----------------------------------------------------------------------------
def _reference(x, conv_w, gamma, beta, running_mean, running_var, k, stride):
    eps = 1e-5
    pad = k // 2
    y = jax.lax.conv_general_dilated(
        x, conv_w, window_strides=(stride, stride),
        padding=((pad, pad), (pad, pad)),
        dimension_numbers=("NCHW", "OIHW", "NCHW"))
    scale = gamma / jnp.sqrt(running_var + eps)
    bias = beta - running_mean * scale
    y = y * scale[None, :, None, None] + bias[None, :, None, None]
    return y * jnp.tanh(jax.nn.softplus(y))


if __name__ == "__main__":
    # BasicConv(in_channels=4, out_channels=8, kernel_size=3), input (2,4,16,16).
    N, C_in, H, W = 2, 4, 16, 16
    C_out, k = 8, 3

    key = jax.random.PRNGKey(0)
    kx, kwt, kg, kb, km, kv = jax.random.split(key, 6)

    x = jax.random.normal(kx, (N, C_in, H, W), dtype=jnp.float32)
    conv_w = jax.random.normal(kwt, (C_out, C_in, k, k), dtype=jnp.float32) * 0.1
    gamma = 1.0 + 0.1 * jax.random.normal(kg, (C_out,), dtype=jnp.float32)
    beta = 0.1 * jax.random.normal(kb, (C_out,), dtype=jnp.float32)
    running_mean = 0.1 * jax.random.normal(km, (C_out,), dtype=jnp.float32)
    running_var = jnp.abs(jax.random.normal(kv, (C_out,), dtype=jnp.float32)) + 0.5

    # stride=1 (primary config) and stride=2 (exercises the strided path).
    for stride in (1, 2):
        out = basic_conv_forward(x, conv_w, gamma, beta, running_mean,
                                 running_var, kernel_size=k, stride=stride)
        out = jax.block_until_ready(out)
        ref = _reference(x, conv_w, gamma, beta, running_mean, running_var,
                         k, stride)
        assert out.shape == ref.shape, (out.shape, ref.shape)
        # bf16 operands on the MXU (f32 accumulate) -> relaxed tolerance.
        max_err = float(jnp.max(jnp.abs(out - ref)))
        assert jnp.allclose(out, ref, atol=2e-2, rtol=2e-2), max_err

    print("KERNEL_OK")
</pallas_src>

<mosaic_0001>
module attributes {stable_mosaic.version = 11 : i64} {
  func.func @_conv_bn_mish_kernel(%arg0: i32, %arg1: memref<128x36xbf16, #tpu.memory_space<vmem>>, %arg2: memref<36x8xbf16, #tpu.memory_space<vmem>>, %arg3: memref<1x8xf32, #tpu.memory_space<vmem>>, %arg4: memref<128x8xf32, #tpu.memory_space<vmem>>) attributes {dimension_semantics = [#tpu.dimension_semantics<parallel>], iteration_bounds = array<i64: 4>, scalar_prefetch = 0 : i64, scratch_operands = 0 : i64, tpu.core_type = #tpu.core_type<tc>, window_params = [{transform_indices = @transform_0, window_bounds = array<i64: 128, 36>}, {pipeline_mode = #tpu.pipeline_mode<synchronous>, transform_indices = @transform_1, window_bounds = array<i64: 36, 8>}, {pipeline_mode = #tpu.pipeline_mode<synchronous>, transform_indices = @transform_2, window_bounds = array<i64: 1, 8>}, {transform_indices = @transform_3, window_bounds = array<i64: 128, 8>}]} {
    %c0 = arith.constant 0 : index
    %c0_0 = arith.constant 0 : index
    %0 = vector.load %arg1[%c0, %c0_0] : memref<128x36xbf16, #tpu.memory_space<vmem>>, vector<128x36xbf16>
    %c0_1 = arith.constant 0 : index
    %c0_2 = arith.constant 0 : index
    %1 = vector.load %arg2[%c0_1, %c0_2] : memref<36x8xbf16, #tpu.memory_space<vmem>>, vector<36x8xbf16>
    %cst = arith.constant dense<0.000000e+00> : vector<128x8xf32>
    %2 = tpu.matmul %0, %1, %cst {dimension_numbers = #tpu.dot_dimension_numbers<[1], [0], [0], [1], [0, 0, 1, 1], [], []>} : vector<128x36xbf16>, vector<36x8xbf16>, vector<128x8xf32> -> vector<128x8xf32>
    %c0_3 = arith.constant 0 : index
    %c0_4 = arith.constant 0 : index
    %3 = vector.load %arg3[%c0_3, %c0_4] : memref<1x8xf32, #tpu.memory_space<vmem>>, vector<1x8xf32>
    %4 = vector.broadcast %3 : vector<1x8xf32> to vector<128x8xf32>
    %5 = arith.addf %2, %4 : vector<128x8xf32>
    %cst_5 = arith.constant 2.000000e+01 : f32
    %6 = vector.broadcast %cst_5 : f32 to vector<128x8xf32>
    %7 = arith.minimumf %5, %6 : vector<128x8xf32>
    %8 = math.exp %7 : vector<128x8xf32>
    %cst_6 = arith.constant 2.000000e+00 : f32
    %9 = vector.broadcast %cst_6 : f32 to vector<128x8xf32>
    %10 = arith.addf %8, %9 : vector<128x8xf32>
    %11 = arith.mulf %8, %10 : vector<128x8xf32>
    %cst_7 = arith.constant 2.000000e+00 : f32
    %12 = vector.broadcast %cst_7 : f32 to vector<128x8xf32>
    %13 = arith.addf %11, %12 : vector<128x8xf32>
    %14 = arith.divf %11, %13 : vector<128x8xf32>
    %15 = arith.mulf %5, %14 : vector<128x8xf32>
    %c0_8 = arith.constant 0 : index
    %c0_9 = arith.constant 0 : index
    %16 = vector.load %arg4[%c0_8, %c0_9] : memref<128x8xf32, #tpu.memory_space<vmem>>, vector<128x8xf32>
    tpu.vector_store %arg4[%c0_8, %c0_9], %15 {strides = array<i32>} : memref<128x8xf32, #tpu.memory_space<vmem>>, vector<128x8xf32>,
    return
  }
  func.func @transform_0(%arg0: i32) -> (i32, i32) {
    %c0_i32 = arith.constant 0 : i32
    %c0_i32_0 = arith.constant 0 : i32
    return %arg0, %c0_i32 : i32, i32
  }
  func.func @transform_1(%arg0: i32) -> (i32, i32) {
    %c0_i32 = arith.constant 0 : i32
    %c0_i32_0 = arith.constant 0 : i32
    %c0_i32_1 = arith.constant 0 : i32
    return %c0_i32, %c0_i32_0 : i32, i32
  }
  func.func @transform_2(%arg0: i32) -> (i32, i32) {
    %c0_i32 = arith.constant 0 : i32
    %c0_i32_0 = arith.constant 0 : i32
    %c0_i32_1 = arith.constant 0 : i32
    return %c0_i32, %c0_i32_0 : i32, i32
  }
  func.func @transform_3(%arg0: i32) -> (i32, i32) {
    %c0_i32 = arith.constant 0 : i32
    %c0_i32_0 = arith.constant 0 : i32
    return %arg0, %c0_i32 : i32, i32
  }
}

</mosaic_0001>

<bundles_post_ra>
// kernel: basic_conv_forward.1
= control target key start
LH: loop header
LB: loop body
LE: loop exit
PB: predicated region body
PF: predicated region fallthrough
CT: control target
= control target key end

     0   :  { %s937_s12 = smov 0   ;;  %s1356_s0 = inlined_call_operand.vmem [shape: bf16[512,36], index: 0, kind: input, shape index: {}]   ;;  %s1357_s1 = inlined_call_operand.vmem [shape: bf16[36,8], index: 1, kind: input, shape index: {}]   ;;  %s1358_s2 = inlined_call_operand.vmem [shape: f32[1,8], index: 2, kind: input, shape index: {}]   ;;  %s1359_s3 = inlined_call_operand.vmem [shape: f32[512,8], index: 3, kind: output, shape index: {}]  }
   0x1 LB: > { %s758_s13 = sadd.s32 4294967295, %s915_s12   ;;  %p762_p0 = scmp.ge.s32.totalorder %s915_s12, 1  ;;  %s915_s12 = sphi %s937_s12, %s13_s12  }
   0x2   : > { %p138_p1 = scmp.lt.s32.totalorder %s915_s12, 5 }
   0x4   : > { %p139_p2 = pnand %p762_p0, %p138_p1 }
   0x5   : > { %s763_s16 = sshll.u32 (!%p139_p2), %s758_s13, 4 }
   0x6   : > { %142 = sbr.rel (%p139_p2) target bundleno = 261 (0x105), region = 32  ;;  %p163_p3 = scmp.lt.s32.totalorder (!%p139_p2), %s763_s16, 63 }
   0xb   : > { %v195_v0 = vld [vmem:[%s1357_s1 + $0x10] sm:$0x3]  ;;  %vm280_vm0 = vcmask 1041408   ;;  %s1381_s16 = smov (!%p163_p3, %s763_s16), 63  ;;  %v826_v4 = vld [vmem:[%s1357_s1 + $0x8] sm:$0xff]  ;;  %v825_v5 = vld [vmem:[%s1357_s1] sm:$0xff] }
   0xc   : > { %v249_v1 = vunpack.c.l.b16 %v195_v0  ;;  %s764_s19 = sshll.u32 %s1381_s16, 2  ;;  %vm255_vm1 = vcmask 293888   ;;  %v971_v14 = vld [vmem:[%s1358_s2] ss:$0 sm:$0xff]  ;;  %vm685_vm5 = vcmask 64512   ;;  %s766_s27 = sshll.u32 %s1381_s16, 3 }
   0xd   : > { %s166_s24 = scalar_lea.vmem %s1356_s0, %s764_s19  ;;  %s1097_s30 = scalar_lea.vmem %s1359_s3, %s766_s27 }
   0xe   : > { %v252_v2 = vpack.c.b16 %v249_v1, %v249_v1  ;;  %v817_v6 = vld [vmem:[%s166_s24] sm:$0xff]  ;;  %v819_v7 = vld [vmem:[%s166_s24 + $0x10] sm:$0xff]  ;;  %v818_v10 = vld [vmem:[%s166_s24 + $0x8] sm:$0xff] }
   0xf   : > { %v821_v8 = vld [vmem:[%s166_s24 + $0x20] sm:$0xff]  ;;  %v823_v9 = vld [vmem:[%s166_s24 + $0x30] sm:$0xff]  ;;  %v820_v11 = vld [vmem:[%s166_s24 + $0x18] sm:$0xff] }
  0x10   : > { %v282_v3 = vsel %vm280_vm0, %v252_v2, 0  ;;  %v822_v12 = vld [vmem:[%s166_s24 + $0x28] sm:$0xff]  ;;  %v824_v13 = vld [vmem:[%s166_s24 + $0x38] sm:$0xff] }
  0x11   : > { %289 = vmatpush.bf16.msra.mxu0 %v282_v3  ;;  %827 = vmatpush.bf16.msra.mxu1 %v282_v3 }
  0x12   : > { %828 = vmatpush.bf16.msra.mxu2 %v282_v3  ;;  %829 = vmatpush.bf16.msra.mxu3 %v282_v3 }
  0x15   : > { %290 = vmatpush.bf16.msra.mxu0 %v826_v4  ;;  %830 = vmatpush.bf16.msra.mxu1 %v826_v4 }
  0x16   : > { %831 = vmatpush.bf16.msra.mxu2 %v826_v4  ;;  %832 = vmatpush.bf16.msra.mxu3 %v826_v4 }
  0x19   : > { %291 = vmatpush.bf16.msra.mxu0 %v825_v5  ;;  %833 = vmatpush.bf16.msra.mxu1 %v825_v5 }
  0x1a   : > { %834 = vmatpush.bf16.msra.mxu2 %v825_v5  ;;  %835 = vmatpush.bf16.msra.mxu3 %v825_v5 }
  0x1c   : > { %807 = vmatmul.msk.bf16.vlgmr.msra.gmra.mxu0 %vm255_vm1, %v817_v6  ;;  %809 = vmatmul.msk.bf16.vlgmr.msra.gmra.mxu1 %vm255_vm1, %v819_v7 }
  0x1d   : > { %811 = vmatmul.msk.bf16.vlgmr.msra.gmra.mxu2 %vm255_vm1, %v821_v8  ;;  %813 = vmatmul.msk.bf16.vlgmr.msra.gmra.mxu3 %vm255_vm1, %v823_v9 }
  0x2c   : > { %808 = vmatmul.msk.bf16.gmra.mxu0 %vm255_vm1, %v818_v10  ;;  %810 = vmatmul.msk.bf16.gmra.mxu1 %vm255_vm1, %v820_v11 }
  0x2d   : > { %812 = vmatmul.msk.bf16.gmra.mxu2 %vm255_vm1, %v822_v12  ;;  %814 = vmatmul.msk.bf16.gmra.mxu3 %vm255_vm1, %v824_v13 }
  0x99   : > { %v293_v15 = vpop.f32.mrf.mxu0  ;;  %v303_v16 = vpop.f32.mrf.mxu1 }
  0x9a   : > { %v974_v17 = vadd.f32 %v971_v14, %v293_v15  ;;  %v977_v18 = vadd.f32 %v971_v14, %v303_v16 }
  0x9c   : > { %v333_v19 = vmin.f32 %v974_v17, 20.0  ;;  %v337_v20 = vmin.f32 %v977_v18, 20.0 }
  0x9e   : > { %v349_v21 = vmul.f32 1.442695, %v333_v19  ;;  %v357_v22 = vmul.f32 1.442695, %v337_v20 }
  0xa0   : > { %845 = vpow2.f32 %v349_v21  ;;  %v313_v23 = vpop.f32.mrf.mxu2  ;;  %v323_v24 = vpop.f32.mrf.mxu3 }
  0xa1   : > { %847 = vpow2.f32 %v357_v22  ;;  %v982_v25 = vadd.f32 %v971_v14, %v313_v23  ;;  %v985_v26 = vadd.f32 %v971_v14, %v323_v24  ;;  %v295_v27 = vpop.f32.mrf.mxu0  ;;  %v305_v28 = vpop.f32.mrf.mxu1 }
  0xa2   : > { %v988_v29 = vadd.f32 %v971_v14, %v295_v27  ;;  %v991_v30 = vadd.f32 %v971_v14, %v305_v28 }
  0xa3   : > { %v341_v31 = vmin.f32 %v982_v25, 20.0  ;;  %v345_v32 = vmin.f32 %v985_v26, 20.0 }
  0xa4   : > { %v334_v33 = vmin.f32 %v988_v29, 20.0  ;;  %v338_v34 = vmin.f32 %v991_v30, 20.0 }
  0xa5   : > { %v365_v35 = vmul.f32 1.442695, %v341_v31  ;;  %v373_v36 = vmul.f32 1.442695, %v345_v32 }
  0xa6   : > { %v846_v37 = vpop.eup %845  ;;  %v351_v38 = vmul.f32 1.442695, %v334_v33  ;;  %v359_v39 = vmul.f32 1.442695, %v338_v34 }
  0xa7   : > { %v848_v40 = vpop.eup %847  ;;  %v381_v41 = vadd.f32 2.0, %v846_v37  ;;  %849 = vpow2.f32 %v365_v35 }
  0xa8   : > { %v385_v42 = vadd.f32 2.0, %v848_v40  ;;  %851 = vpow2.f32 %v373_v36  ;;  %v315_v43 = vpop.f32.mrf.mxu2  ;;  %v325_v44 = vpop.f32.mrf.mxu3 }
  0xa9   : > { %v997_v45 = vmul.f32 %v846_v37, %v381_v41  ;;  %853 = vpow2.f32 %v351_v38  ;;  %v1000_v46 = vadd.f32 %v971_v14, %v315_v43  ;;  %v1003_v47 = vadd.f32 %v971_v14, %v325_v44  ;;  %v298_v48 = vpop.f32.mrf.mxu0  ;;  %v308_v51 = vpop.f32.mrf.mxu1 }
  0xaa   : > { %v1005_v49 = vmul.f32 %v848_v40, %v385_v42  ;;  %855 = vpow2.f32 %v359_v39  ;;  %v1008_v50 = vadd.f32 %v971_v14, %v298_v48  ;;  %v1020_v57 = vadd.f32 %v971_v14, %v308_v51 }
  0xab   : > { %v1011_v52 = vadd.f32 2.0, %v997_v45  ;;  %v342_v54 = vmin.f32 %v1000_v46, 20.0  ;;  %v346_v56 = vmin.f32 %v1003_v47, 20.0 }
  0xac   : > { %v1014_v53 = vadd.f32 2.0, %v1005_v49  ;;  %v335_v59 = vmin.f32 %v1008_v50, 20.0  ;;  %v339_v5 = vmin.f32 %v1020_v57, 20.0 }
  0xad   : > { %v850_v55 = vpop.eup %849  ;;  %857 = vrcp.f32 %v1011_v52  ;;  %v367_v1 = vmul.f32 1.442695, %v342_v54  ;;  %v375_v4 = vmul.f32 1.442695, %v346_v56  ;;  %vm434_vm2 = vweird.f32 %v1011_v52 }
  0xae   : > { %v852_v58 = vpop.eup %851  ;;  %859 = vrcp.f32 %v1014_v53  ;;  %v389_v61 = vadd.f32 2.0, %v850_v55  ;;  %v438_v6 = vand.u32 2147483647, %v1011_v52  ;;  %v353_v8 = vmul.f32 1.442695, %v335_v59 }
  0xaf   : > { %v854_v60 = vpop.eup %853  ;;  %v393_v62 = vadd.f32 2.0, %v852_v58  ;;  %861 = vpow2.f32 %v367_v1  ;;  %v440_v16 = vand.u32 2147483648, %v1011_v52  ;;  %vm494_vm3 = vweird.f32 %v1014_v53 }
  0xb0   : > { %v856_v63 = vpop.eup %855  ;;  %v382_v0 = vadd.f32 2.0, %v854_v60  ;;  %v1024_v2 = vmul.f32 %v850_v55, %v389_v61  ;;  %863 = vpow2.f32 %v375_v4  ;;  %v498_v21 = vand.u32 2147483647, %v1014_v53 }
  0xb1   : > { %v1026_v3 = vmul.f32 %v852_v58, %v393_v62  ;;  %v386_v12 = vadd.f32 2.0, %v856_v63  ;;  %865 = vpow2.f32 %v353_v8  ;;  %vm1048_vm4 = vcmp.eq.f32.partialorder %v438_v6, 8.507059e+37 }
  0xb2   : > { %v1031_v7 = vmul.f32 %v854_v60, %v382_v0  ;;  %v1034_v10 = vadd.f32 2.0, %v1024_v2  ;;  %v500_v24 = vand.u32 2147483648, %v1014_v53  ;;  %v441_v37 = vor.u32 1.1754944e-38, %v440_v16 }
  0xb3   : > { %v858_v9 = vpop.eup %857  ;;  %v1037_v11 = vadd.f32 2.0, %v1026_v3  ;;  %v1056_v32 = vmul.f32 %v856_v63, %v386_v12  ;;  %vm1061_vm8 = vcmp.eq.f32.partialorder %v498_v21, 8.507059e+37 }
  0xb4   : > { %v860_v13 = vpop.eup %859  ;;  %v430_v15 = vmul.f32 %v858_v9, %v1011_v52  ;;  %v1042_v19 = vadd.f32 2.0, %v1031_v7  ;;  %867 = vrcp.f32 %v1034_v10  ;;  %v560_v28 = vand.u32 2147483648, %v1034_v10 }
  0xb5   : > { %v490_v20 = vmul.f32 %v860_v13, %v1014_v53  ;;  %869 = vrcp.f32 %v1037_v11  ;;  %v620_v31 = vand.u32 2147483648, %v1037_v11  ;;  %v862_v33 = vpop.eup %861  ;;  %vm435_vm6 = vweird.f32 %v858_v9 }
  0xb6   : > { %v431_v22 = vsub.f32 1.0, %v430_v15  ;;  %v558_v35 = vand.u32 2147483647, %v1034_v10  ;;  %871 = vrcp.f32 %v1042_v19  ;;  %v864_v36 = vpop.eup %863  ;;  %vm495_vm7 = vweird.f32 %v860_v13  ;;  %vm436_vm10 = vmor %vm434_vm2, %vm435_vm6 }
  0xb7   : > { %v491_v27 = vsub.f32 1.0, %v490_v20  ;;  %v618_v39 = vand.u32 2147483647, %v1037_v11  ;;  %v866_v40 = vpop.eup %865  ;;  %v501_v43 = vor.u32 1.1754944e-38, %v500_v24  ;;  %vm554_vm9 = vweird.f32 %v1034_v10  ;;  %vm496_vm12 = vmor %vm494_vm3, %vm495_vm7 }
  0xb8   : > { %v432_v34 = vmul.f32 %v858_v9, %v431_v22  ;;  %v561_v51 = vor.u32 1.1754944e-38, %v560_v28  ;;  %vm614_vm11 = vweird.f32 %v1037_v11  ;;  %v621_v54 = vor.u32 1.1754944e-38, %v620_v31 }
  0xb9   : > { %v492_v38 = vmul.f32 %v860_v13, %v491_v27  ;;  %v453_v55 = vand.u32 2147483647, %v1042_v19  ;;  %vm1075_vm13 = vcmp.eq.f32.partialorder %v558_v35, 8.507059e+37  ;;  %v455_v52 = vand.u32 2147483648, %v1042_v19 }
  0xba   : > { %v433_v41 = vadd.f32 %v858_v9, %v432_v34  ;;  %v868_v44 = vpop.eup %867  ;;  %v1081_v61 = vadd.f32 2.0, %v1056_v32  ;;  %vm1086_vm14 = vcmp.eq.f32.partialorder %v618_v39, 8.507059e+37  ;;  %vm449_vm15 = vweird.f32 %v1042_v19 }
  0xbb   : > { %v493_v48 = vadd.f32 %v860_v13, %v492_v38  ;;  %v870_v56 = vpop.eup %869  ;;  %v550_v59 = vmul.f32 %v868_v44, %v1034_v10  ;;  %v390_v1 = vadd.f32 2.0, %v862_v33  ;;  %v394_v12 = vadd.f32 2.0, %v864_v36 }
  0xbc   : > { %v437_v58 = vsel %vm436_vm10, %v858_v9, %v433_v41  ;;  %v610_v0 = vmul.f32 %v870_v56, %v1037_v11  ;;  %v872_v4 = vpop.eup %871  ;;  %v383_v20 = vadd.f32 2.0, %v866_v40  ;;  %vm555_vm0 = vweird.f32 %v868_v44 }
  0xbd   : > { %v442_v62 = vsel %vm1048_vm4, %v441_v37, %v437_v58  ;;  %v497_v63 = vsel %vm496_vm12, %v860_v13, %v493_v48  ;;  %v551_v9 = vsub.f32 1.0, %v550_v59  ;;  %v445_v16 = vmul.f32 %v872_v4, %v1042_v19  ;;  %vm556_vm3 = vmor %vm554_vm9, %vm555_vm0  ;;  %v318_v58 = vpop.f32.mrf.mxu2 }
  0xbe   : > { %v443_v6 = vmul.f32 %v442_v62, %v997_v45  ;;  %v502_v8 = vsel %vm1061_vm8, %v501_v43, %v497_v63  ;;  %v611_v15 = vsub.f32 1.0, %v610_v0  ;;  %873 = vrcp.f32 %v1081_v61  ;;  %v328_v63 = vpop.f32.mrf.mxu3 }
  0xbf   : > { %v503_v13 = vmul.f32 %v502_v8, %v1005_v49  ;;  %v552_v21 = vmul.f32 %v868_v44, %v551_v9  ;;  %vm615_vm1 = vweird.f32 %v870_v56  ;;  %v446_v24 = vsub.f32 1.0, %v445_v16 }
  0xc0   : > { %v669_v45 = vmul.f32 %v443_v6, %v974_v17  ;;  %v612_v23 = vmul.f32 %v870_v56, %v611_v15  ;;  %vm1106_vm2 = vcmp.eq.f32.partialorder %v453_v55, 8.507059e+37  ;;  %v1110_v28 = vmul.f32 %v862_v33, %v390_v1  ;;  %vm616_vm6 = vmor %vm614_vm11, %vm615_vm1  ;;  %v300_v6 = vpop.f32.mrf.mxu0 }
  0xc1   : > { %v673_v22 = vmul.f32 %v503_v13, %v977_v18  ;;  %v553_v27 = vadd.f32 %v868_v44, %v552_v21  ;;  %v1112_v31 = vmul.f32 %v864_v36, %v394_v12  ;;  %v447_v18 = vmul.f32 %v872_v4, %v446_v24 }
  0xc2   : > { %686 = vst.msk [vmem:[%s1097_s30] sm:$0xff] %vm685_vm5, %v669_v45  ;;  %v613_v17 = vadd.f32 %v870_v56, %v612_v23  ;;  %vm450_vm4 = vweird.f32 %v872_v4  ;;  %v1118_v34 = vmul.f32 %v866_v40, %v383_v20  ;;  %v456_v37 = vor.u32 1.1754944e-38, %v455_v52 }
  0xc3   : > { %690 = vst.msk [vmem:[%s1097_s30 + $0x20] sm:$0xff] %vm685_vm5, %v673_v22  ;;  %v557_v35 = vsel %vm556_vm3, %v868_v44, %v553_v27  ;;  %v513_v33 = vand.u32 2147483647, %v1081_v61  ;;  %v1124_v36 = vadd.f32 2.0, %v1110_v28  ;;  %v448_v39 = vadd.f32 %v872_v4, %v447_v18  ;;  %vm451_vm7 = vmor %vm449_vm15, %vm450_vm4 }
  0xc4   : > { %v562_v38 = vsel %vm1075_vm13, %v561_v51, %v557_v35  ;;  %v617_v10 = vsel %vm616_vm6, %v870_v56, %v613_v17  ;;  %v1129_v41 = vadd.f32 2.0, %v1112_v31  ;;  %v874_v40 = vpop.eup %873  ;;  %v515_v43 = vand.u32 2147483648, %v1081_v61 }
  0xc5   : > { %v563_v42 = vmul.f32 %v562_v38, %v1024_v2  ;;  %v622_v11 = vsel %vm1086_vm14, %v621_v54, %v617_v10  ;;  %875 = vrcp.f32 %v1124_v36  ;;  %v452_v48 = vsel %vm451_vm7, %v872_v4, %v448_v39 }
  0xc6   : > { %v623_v44 = vmul.f32 %v622_v11, %v1026_v3  ;;  %v505_v51 = vmul.f32 %v874_v40, %v1081_v61  ;;  %v1141_v55 = vadd.f32 2.0, %v1118_v34  ;;  %v457_v19 = vsel %vm1106_vm2, %v456_v37, %v452_v48 }
  0xc7   : > { %v677_v2 = vmul.f32 %v563_v42, %v982_v25  ;;  %v573_v54 = vand.u32 2147483647, %v1124_v36  ;;  %v575_v56 = vand.u32 2147483648, %v1124_v36  ;;  %v458_v3 = vmul.f32 %v457_v19, %v1031_v7 }
  0xc8   : > { %v681_v59 = vmul.f32 %v623_v44, %v985_v26  ;;  %v506_v60 = vsub.f32 1.0, %v505_v51  ;;  %877 = vrcp.f32 %v1129_v41  ;;  %vm509_vm8 = vweird.f32 %v1081_v61 }
  0xc9   : > { %694 = vst.msk [vmem:[%s1097_s30 + $0x40] sm:$0xff] %vm685_vm5, %v677_v2  ;;  %vm510_vm9 = vweird.f32 %v874_v40  ;;  %vm1154_vm10 = vcmp.eq.f32.partialorder %v513_v33, 8.507059e+37  ;;  %v361_v52 = vmul.f32 1.442695, %v339_v5  ;;  %v670_v26 = vmul.f32 %v458_v3, %v988_v29  ;;  %v310_v33 = vpop.f32.mrf.mxu1 }
  0xca   : > { %698 = vst.msk [vmem:[%s1097_s30 + $0x60] sm:$0xff] %vm685_vm5, %v681_v59  ;;  %v507_v7 = vmul.f32 %v874_v40, %v506_v60  ;;  %v635_v62 = vand.u32 2147483648, %v1129_v41  ;;  %879 = vrcp.f32 %v1141_v55  ;;  %v516_v53 = vor.u32 1.1754944e-38, %v515_v43  ;;  %vm511_vm13 = vmor %vm509_vm8, %vm510_vm9 }
  0xcb   : > { %v876_v0 = vpop.eup %875  ;;  %vm569_vm11 = vweird.f32 %v1124_v36  ;;  %v576_v1 = vor.u32 1.1754944e-38, %v575_v56  ;;  %v633_v4 = vand.u32 2147483647, %v1129_v41  ;;  %687 = vst.msk [vmem:[%s1097_s30 + $0x8] sm:$0xff] %vm685_vm5, %v670_v26  ;;  %vm1170_vm12 = vcmp.eq.f32.partialorder %v573_v54, 8.507059e+37  ;;  %v330_v56 = vpop.f32.mrf.mxu3 }
  0xcc   : > { %v508_v5 = vadd.f32 %v874_v40, %v507_v7  ;;  %v565_v8 = vmul.f32 %v876_v0, %v1124_v36  ;;  %v468_v9 = vand.u32 2147483647, %v1141_v55  ;;  %v470_v12 = vand.u32 2147483648, %v1141_v55 }
  0xcd   : > { %vm570_vm14 = vweird.f32 %v876_v0  ;;  %vm629_vm15 = vweird.f32 %v1129_v41  ;;  %v636_v13 = vor.u32 1.1754944e-38, %v635_v62  ;;  %881 = vpow2.f32 %v361_v52 }
  0xce   : > { %v1181_v15 = vadd.f32 %v971_v14, %v318_v58  ;;  %v878_v16 = vpop.eup %877  ;;  %v512_v20 = vsel %vm511_vm13, %v874_v40, %v508_v5  ;;  %v566_v45 = vsub.f32 1.0, %v565_v8  ;;  %v1184_v21 = vadd.f32 %v971_v14, %v328_v63  ;;  %v320_v40 = vpop.f32.mrf.mxu2  ;;  %vm571_vm4 = vmor %vm569_vm11, %vm570_vm14 }
  0xcf   : > { %v1187_v22 = vadd.f32 %v971_v14, %v300_v6  ;;  %v517_v61 = vsel %vm1154_vm10, %v516_v53, %v512_v20  ;;  %v625_v23 = vmul.f32 %v878_v16, %v1129_v41  ;;  %vm630_vm0 = vweird.f32 %v878_v16 }
  0xd0   : > { %vm1192_vm1 = vcmp.eq.f32.partialorder %v633_v4, 8.507059e+37  ;;  %vm464_vm2 = vweird.f32 %v1141_v55  ;;  %v343_v27 = vmin.f32 %v1181_v15, 20.0  ;;  %v880_v49 = vpop.eup %879  ;;  %v518_v17 = vmul.f32 %v517_v61, %v1056_v32  ;;  %vm631_vm6 = vmor %vm629_vm15, %vm630_vm0 }
  0xd1   : > { %v567_v18 = vmul.f32 %v876_v0, %v566_v45  ;;  %v347_v35 = vmin.f32 %v1184_v21, 20.0  ;;  %v336_v37 = vmin.f32 %v1187_v22, 20.0  ;;  %v626_v38 = vsub.f32 1.0, %v625_v23 }
  0xd2   : > { %v460_v10 = vmul.f32 %v880_v49, %v1141_v55  ;;  %vm465_vm3 = vweird.f32 %v880_v49  ;;  %v369_v39 = vmul.f32 1.442695, %v343_v27  ;;  %v674_v42 = vmul.f32 %v518_v17, %v991_v30 }
  0xd3   : > { %v568_v11 = vadd.f32 %v876_v0, %v567_v18  ;;  %v377_v43 = vmul.f32 1.442695, %v347_v35  ;;  %v355_v44 = vmul.f32 1.442695, %v336_v37  ;;  %v882_v48 = vpop.eup %881  ;;  %v627_v32 = vmul.f32 %v878_v16, %v626_v38  ;;  %vm466_vm7 = vmor %vm464_vm2, %vm465_vm3 }
  0xd4   : > { %v461_v51 = vsub.f32 1.0, %v460_v10  ;;  %883 = vpow2.f32 %v369_v39  ;;  %v1207_v2 = vadd.f32 %v971_v14, %v310_v33  ;;  %691 = vst.msk [vmem:[%s1097_s30 + $0x28] sm:$0xff] %vm685_vm5, %v674_v42  ;;  %v387_v54 = vadd.f32 2.0, %v882_v48 }
  0xd5   : > { %v572_v19 = vsel %vm571_vm4, %v876_v0, %v568_v11  ;;  %885 = vpow2.f32 %v377_v43  ;;  %v1212_v30 = vadd.f32 %v971_v14, %v320_v40  ;;  %v628_v36 = vadd.f32 %v878_v16, %v627_v32 }
  0xd6   : > { %v577_v58 = vsel %vm1170_vm12, %v576_v1, %v572_v19  ;;  %v462_v59 = vmul.f32 %v880_v49, %v461_v51  ;;  %887 = vpow2.f32 %v355_v44  ;;  %v1220_v60 = vmul.f32 %v882_v48, %v387_v54 }
  0xd7   : > { %v578_v3 = vmul.f32 %v577_v58, %v1110_v28  ;;  %v340_v25 = vmin.f32 %v1207_v2, 20.0  ;;  %v344_v52 = vmin.f32 %v1212_v30, 20.0  ;;  %v632_v26 = vsel %vm631_vm6, %v878_v16, %v628_v36 }
  0xd8   : > { %v463_v7 = vadd.f32 %v880_v49, %v462_v59  ;;  %v471_v62 = vor.u32 1.1754944e-38, %v470_v12  ;;  %v1225_v63 = vadd.f32 %v971_v14, %v330_v56  ;;  %v637_v28 = vsel %vm1192_vm1, %v636_v13, %v632_v26 }
  0xd9   : > { %v678_v0 = vmul.f32 %v578_v3, %v1000_v46  ;;  %v419_v41 = vadd.f32 2.0, %v1220_v60  ;;  %v363_v53 = vmul.f32 1.442695, %v340_v25  ;;  %v638_v4 = vmul.f32 %v637_v28, %v1112_v31 }
  0xda   : > { %v884_v1 = vpop.eup %883  ;;  %v467_v6 = vsel %vm466_vm7, %v880_v49, %v463_v7  ;;  %vm469_vm8 = vcmp.eq.f32.partialorder %v468_v9, 8.507059e+37  ;;  %v371_v14 = vmul.f32 1.442695, %v344_v52  ;;  %v348_v8 = vmin.f32 %v1225_v63, 20.0 }
  0xdb   : > { %v886_v46 = vpop.eup %885  ;;  %695 = vst.msk [vmem:[%s1097_s30 + $0x48] sm:$0xff] %vm685_vm5, %v678_v0  ;;  %v472_v5 = vsel %vm469_vm8, %v471_v62, %v467_v6  ;;  %889 = vrcp.f32 %v419_v41  ;;  %v682_v12 = vmul.f32 %v638_v4, %v1003_v47  ;;  %v391_v31 = vadd.f32 2.0, %v884_v1 }
  0xdc   : > { %v888_v29 = vpop.eup %887  ;;  %v473_v13 = vmul.f32 %v472_v5, %v1118_v34  ;;  %v395_v16 = vadd.f32 2.0, %v886_v46  ;;  %891 = vpow2.f32 %v363_v53  ;;  %v379_v23 = vmul.f32 1.442695, %v348_v8 }
  0xdd   : > { %v384_v20 = vadd.f32 2.0, %v888_v29  ;;  %699 = vst.msk [vmem:[%s1097_s30 + $0x68] sm:$0xff] %vm685_vm5, %v682_v12  ;;  %v1245_v9 = vmul.f32 %v884_v1, %v391_v31  ;;  %893 = vpow2.f32 %v371_v14  ;;  %v528_v24 = vand.u32 2147483647, %v419_v41 }
  0xde   : > { %v671_v55 = vmul.f32 %v473_v13, %v1008_v50  ;;  %v1247_v45 = vmul.f32 %v886_v46, %v395_v16  ;;  %895 = vpow2.f32 %v379_v23  ;;  %v530_v17 = vand.u32 2147483648, %v419_v41 }
  0xdf   : > { %v1249_v61 = vmul.f32 %v888_v29, %v384_v20  ;;  %v1254_v47 = vadd.f32 2.0, %v1245_v9  ;;  %vm524_vm9 = vweird.f32 %v419_v41  ;;  %vm1265_vm10 = vcmp.eq.f32.partialorder %v528_v24, 8.507059e+37 }
  0xe0   : > { %688 = vst.msk [vmem:[%s1097_s30 + $0x10] sm:$0xff] %vm685_vm5, %v671_v55  ;;  %v1257_v27 = vadd.f32 2.0, %v1247_v45  ;;  %v531_v10 = vor.u32 1.1754944e-38, %v530_v17 }
  0xe1   : > { %v890_v34 = vpop.eup %889  ;;  %v1260_v50 = vadd.f32 2.0, %v1249_v61  ;;  %897 = vrcp.f32 %v1254_v47  ;;  %v588_v39 = vand.u32 2147483647, %v1254_v47  ;;  %vm584_vm12 = vweird.f32 %v1254_v47 }
  0xe2   : > { %v520_v49 = vmul.f32 %v890_v34, %v419_v41  ;;  %v892_v18 = vpop.eup %891  ;;  %899 = vrcp.f32 %v1257_v27  ;;  %vm525_vm11 = vweird.f32 %v890_v34  ;;  %v590_v42 = vand.u32 2147483648, %v1254_v47 }
  0xe3   : > { %v894_v35 = vpop.eup %893  ;;  %901 = vrcp.f32 %v1260_v50  ;;  %v388_v11 = vadd.f32 2.0, %v892_v18  ;;  %vm644_vm13 = vweird.f32 %v1257_v27  ;;  %v648_v32 = vand.u32 2147483647, %v1257_v27  ;;  %vm526_vm14 = vmor %vm524_vm9, %vm525_vm11 }
  0xe4   : > { %v521_v37 = vsub.f32 1.0, %v520_v49  ;;  %v896_v40 = vpop.eup %895  ;;  %v392_v43 = vadd.f32 2.0, %v894_v35  ;;  %v650_v56 = vand.u32 2147483648, %v1257_v27  ;;  %vm1281_vm15 = vcmp.eq.f32.partialorder %v588_v39, 8.507059e+37 }
  0xe5   : > { %v396_v51 = vadd.f32 2.0, %v896_v40  ;;  %v1277_v58 = vmul.f32 %v892_v18, %v388_v11  ;;  %v483_v26 = vand.u32 2147483647, %v1260_v50  ;;  %v485_v46 = vand.u32 2147483648, %v1260_v50 }
  0xe6   : > { %v522_v38 = vmul.f32 %v890_v34, %v521_v37  ;;  %v1279_v36 = vmul.f32 %v894_v35, %v392_v43  ;;  %v591_v13 = vor.u32 1.1754944e-38, %v590_v42  ;;  %vm479_vm4 = vweird.f32 %v1260_v50 }
  0xe7   : > { %v898_v44 = vpop.eup %897  ;;  %v1290_v28 = vmul.f32 %v896_v40, %v396_v51  ;;  %v1294_v1 = vadd.f32 2.0, %v1277_v58  ;;  %vm649_vm7 = vcmp.eq.f32.partialorder %v648_v32, 8.507059e+37  ;;  %v651_v16 = vor.u32 1.1754944e-38, %v650_v56 }
  0xe8   : > { %v523_v48 = vadd.f32 %v890_v34, %v522_v38  ;;  %v900_v19 = vpop.eup %899  ;;  %v580_v54 = vmul.f32 %v898_v44, %v1254_v47  ;;  %v1297_v4 = vadd.f32 2.0, %v1279_v36  ;;  %vm585_vm0 = vweird.f32 %v898_v44 }
  0xe9   : > { %v902_v59 = vpop.eup %901  ;;  %v640_v52 = vmul.f32 %v900_v19, %v1257_v27  ;;  %vm645_vm1 = vweird.f32 %v900_v19  ;;  %903 = vrcp.f32 %v1294_v1  ;;  %v1303_v12 = vadd.f32 2.0, %v1290_v28  ;;  %vm586_vm3 = vmor %vm584_vm12, %vm585_vm0 }
  0xea   : > { %v527_v3 = vsel %vm526_vm14, %v890_v34, %v523_v48  ;;  %v581_v62 = vsub.f32 1.0, %v580_v54  ;;  %v475_v0 = vmul.f32 %v902_v59, %v1260_v50  ;;  %vm480_vm2 = vweird.f32 %v902_v59  ;;  %vm646_vm6 = vmor %vm644_vm13, %vm645_vm1 }
  0xeb   : > { %v532_v7 = vsel %vm1265_vm10, %v531_v10, %v527_v3  ;;  %v641_v53 = vsub.f32 1.0, %v640_v52  ;;  %905 = vrcp.f32 %v1297_v4  ;;  %vm481_vm8 = vmor %vm479_vm4, %vm480_vm2  ;;  %vm484_vm9 = vcmp.eq.f32.partialorder %v483_v26, 8.507059e+37 }
  0xec   : > { %v533_v41 = vmul.f32 %v532_v7, %v1220_v60  ;;  %v582_v6 = vmul.f32 %v898_v44, %v581_v62  ;;  %v476_v14 = vsub.f32 1.0, %v475_v0  ;;  %v486_v47 = vor.u32 1.1754944e-38, %v485_v46 }
  0xed   : > { %v642_v8 = vmul.f32 %v900_v19, %v641_v53  ;;  %907 = vrcp.f32 %v1303_v12  ;;  %vm539_vm11 = vweird.f32 %v1294_v1  ;;  %v665_v56 = vand.u32 2147483648, %v1303_v12 }
  0xee   : > { %v675_v5 = vmul.f32 %v533_v41, %v1020_v57  ;;  %v583_v60 = vadd.f32 %v898_v44, %v582_v6  ;;  %v477_v29 = vmul.f32 %v902_v59, %v476_v14  ;;  %v663_v25 = vand.u32 2147483647, %v1303_v12 }
  0xef   : > { %v643_v31 = vadd.f32 %v900_v19, %v642_v8  ;;  %v904_v27 = vpop.eup %903  ;;  %v666_v53 = vor.u32 1.1754944e-38, %v665_v56 }
  0xf0   : > { %692 = vst.msk [vmem:[%s1097_s30 + $0x30] sm:$0xff] %vm685_vm5, %v675_v5  ;;  %v587_v57 = vsel %vm586_vm3, %v898_v44, %v583_v60  ;;  %v478_v20 = vadd.f32 %v902_v59, %v477_v29  ;;  %v535_v37 = vmul.f32 %v904_v27, %v1294_v1  ;;  %vm540_vm10 = vweird.f32 %v904_v27 }
  0xf1   : > { %v592_v55 = vsel %vm1281_vm15, %v591_v13, %v587_v57  ;;  %v647_v23 = vsel %vm646_vm6, %v900_v19, %v643_v31  ;;  %v906_v33 = vpop.eup %905  ;;  %v603_v44 = vand.u32 2147483647, %v1297_v4  ;;  %vm541_vm13 = vmor %vm539_vm11, %vm540_vm10  ;;  %vm599_vm15 = vweird.f32 %v1297_v4 }
  0xf2   : > { %v593_v34 = vmul.f32 %v592_v55, %v1245_v9  ;;  %v652_v24 = vsel %vm649_vm7, %v651_v16, %v647_v23  ;;  %v482_v50 = vsel %vm481_vm8, %v902_v59, %v478_v20  ;;  %v536_v10 = vsub.f32 1.0, %v535_v37 }
  0xf3   : > { %v653_v49 = vmul.f32 %v652_v24, %v1247_v45  ;;  %v487_v17 = vsel %vm484_vm9, %v486_v47, %v482_v50  ;;  %v595_v39 = vmul.f32 %v906_v33, %v1297_v4  ;;  %v543_v45 = vand.u32 2147483647, %v1294_v1  ;;  %v908_v40 = vpop.eup %907 }
  0xf4   : > { %v679_v18 = vmul.f32 %v593_v34, %v1181_v15  ;;  %v488_v35 = vmul.f32 %v487_v17, %v1249_v61  ;;  %v545_v15 = vand.u32 2147483648, %v1294_v1  ;;  %v537_v61 = vmul.f32 %v904_v27, %v536_v10 }
  0xf5   : > { %v683_v38 = vmul.f32 %v653_v49, %v1184_v21  ;;  %v596_v42 = vsub.f32 1.0, %v595_v39  ;;  %v605_v21 = vand.u32 2147483648, %v1297_v4  ;;  %vm600_vm12 = vweird.f32 %v906_v33 }
  0xf6   : > { %696 = vst.msk [vmem:[%s1097_s30 + $0x50] sm:$0xff] %vm685_vm5, %v679_v18  ;;  %v672_v9 = vmul.f32 %v488_v35, %v1187_v22  ;;  %v655_v22 = vmul.f32 %v908_v40, %v1303_v12  ;;  %v538_v11 = vadd.f32 %v904_v27, %v537_v61  ;;  %vm544_vm14 = vcmp.eq.f32.partialorder %v543_v45, 8.507059e+37  ;;  %vm601_vm0 = vmor %vm599_vm15, %vm600_vm12 }
  0xf7   : > { %700 = vst.msk [vmem:[%s1097_s30 + $0x70] sm:$0xff] %vm685_vm5, %v683_v38  ;;  %v597_v43 = vmul.f32 %v906_v33, %v596_v42  ;;  %v546_v48 = vor.u32 1.1754944e-38, %v545_v15  ;;  %v606_v54 = vor.u32 1.1754944e-38, %v605_v21  ;;  %vm660_vm1 = vweird.f32 %v908_v40 }
  0xf8   : > { %689 = vst.msk [vmem:[%s1097_s30 + $0x18] sm:$0xff] %vm685_vm5, %v672_v9  ;;  %v656_v32 = vsub.f32 1.0, %v655_v22  ;;  %v542_v51 = vsel %vm541_vm13, %v904_v27, %v538_v11  ;;  %vm604_vm2 = vcmp.eq.f32.partialorder %v603_v44, 8.507059e+37  ;;  %vm659_vm3 = vweird.f32 %v1303_v12 }
  0xf9   : > { %v598_v19 = vadd.f32 %v906_v33, %v597_v43  ;;  %v547_v59 = vsel %vm544_vm14, %v546_v48, %v542_v51  ;;  %vm661_vm4 = vmor %vm659_vm3, %vm660_vm1  ;;  %vm664_vm6 = vcmp.eq.f32.partialorder %v663_v25, 8.507059e+37 }
  0xfa   : > { %v657_v3 = vmul.f32 %v908_v40, %v656_v32  ;;  %v548_v52 = vmul.f32 %v547_v59, %v1277_v58 }
  0xfb   : > { %v602_v26 = vsel %vm601_vm0, %v906_v33, %v598_v19 }
  0xfc   : > { %v607_v7 = vsel %vm604_vm2, %v606_v54, %v602_v26  ;;  %v658_v62 = vadd.f32 %v908_v40, %v657_v3  ;;  %v676_v0 = vmul.f32 %v548_v52, %v1207_v2 }
  0xfd   : > { %v608_v41 = vmul.f32 %v607_v7, %v1279_v36 }
  0xfe   : > { %v662_v1 = vsel %vm661_vm4, %v908_v40, %v658_v62  ;;  %693 = vst.msk [vmem:[%s1097_s30 + $0x38] sm:$0xff] %vm685_vm5, %v676_v0 }
  0xff   : > { %v680_v58 = vmul.f32 %v608_v41, %v1212_v30  ;;  %v667_v4 = vsel %vm664_vm6, %v666_v53, %v662_v1 }
 0x100   : > { %v668_v6 = vmul.f32 %v667_v4, %v1290_v28 }
 0x101   : > { %697 = vst.msk [vmem:[%s1097_s30 + $0x58] sm:$0xff] %vm685_vm5, %v680_v58 }
 0x102   : > { %v684_v14 = vmul.f32 %v668_v6, %v1225_v63 }
 0x104   : > { %701 = vst.msk [vmem:[%s1097_s30 + $0x78] sm:$0xff] %vm685_vm5, %v684_v14 }
 0x105 PF: > { %s13_s12 = sadd.s32 1, %s915_s12  }
 0x106   : > { %p10_p4 = scmp.ge.s32.totalorder %s13_s12, 6  }
 0x108   :  { %12 = sbr.rel (!%p10_p4) target bundleno = 1 (0x1), region = 62 }

</bundles_post_ra>
